<compile_context>
chip_gen: v7x
topology: tpu7x:2x2x1
jax: 0.10.0
libtpu: 0.0.40
codegen_flags: <defaults>
</compile_context>

<pallas_src>
import functools

import jax
import jax.numpy as jnp
from jax.experimental import pallas as pl
from jax.experimental.pallas import tpu as pltpu


def _spectral_loss_kernel(w_ref, c_ref, b_ref, o_ref, acc_ref):
    """Grid = (i, j).  W block (tm, tn); C block (tm, kp); B block (tn, kp).

    acc_ref (tm, kp) holds the running (W @ B) partial for this i block.
    o_ref (tm, 1) is written once per i block at the last j step.
    """
    j = pl.program_id(1)

    # Heavy work: one MXU matmul consuming the whole W tile, contraction = tn.
    # Cast-in-kernel keeps the HBM stream in W's native dtype.
    z = jnp.dot(w_ref[...].astype(jnp.float32), b_ref[...],
                preferred_element_type=jnp.float32)

    @pl.when(j == 0)
    def _():
        acc_ref[...] = jnp.zeros_like(acc_ref)

    acc_ref[...] += z

    # Epilogue once per i block: apply the i-side factor and reduce the k+2
    # lanes -> one partial per row.  Final (tiny) sum over rows happens in JAX.
    @pl.when(j == pl.num_programs(1) - 1)
    def _():
        o_ref[...] = jnp.sum(c_ref[...] * acc_ref[...], axis=1, keepdims=True)


def _round_up(x: int, n: int) -> int:
    return int(pl.cdiv(x, n)) * n


def _pad2d(x, rows: int, cols: int):
    pr, pc = rows - x.shape[0], cols - x.shape[1]
    if pr or pc:
        x = jnp.pad(x, ((0, pr), (0, pc)))
    return x


@functools.partial(jax.jit, static_argnames=("is_normalized", "block_i", "block_j"))
def spectralnet_loss(W, Y, is_normalized: bool = False,
                     block_i: int = 1024, block_j: int = 2048):
    """Pallas implementation of SpectralNetLoss.forward."""
    assert block_i % 128 == 0 and block_j % 128 == 0
    m, k = Y.shape
    assert W.shape == (m, m)

    Yf = Y.astype(jnp.float32)

    if is_normalized:
        # Cheap O(m^2) rowsum + O(m*k) scale: stays in JAX glue (a second pass
        # over W is algorithmically required before B/C can be formed).
        # TODO(synk): no zero guard on rowsum(W), matching the torch reference.
        D = jnp.sum(W.astype(jnp.float32), axis=1)
        Yf = Yf / D[:, None]

    # Augmented factors (precompute ||Y||^2 once; folds the sq_i / sq_j terms
    # into the same MXU matmul as the cross term).
    sq = jnp.sum(Yf * Yf, axis=1, keepdims=True)          # (m, 1)
    ones = jnp.ones((m, 1), jnp.float32)
    B = jnp.concatenate([Yf, sq, ones], axis=1)           # (m, k+2)  RHS
    C = jnp.concatenate([-2.0 * Yf, ones, sq], axis=1)    # (m, k+2)  i-side
    kp = k + 2

    # Tile selection: large rectangular W tiles (lane dim multiple of 128),
    # clamped for small m.  Defaults give a 1024 x 2048 f32 W block (8 MiB,
    # 16 MiB double-buffered) -> fits on v5e/v6e (128 MiB VMEM) and v7x
    # (64 MiB VMEM) with headroom.
    tm = min(block_i, _round_up(m, 128))
    tn = min(block_j, _round_up(m, 128))
    mi_pad = _round_up(m, tm)
    mj_pad = _round_up(m, tn)

    # Zero-pad the tail instead of falling back to a single full-array block.
    Wp = _pad2d(W, mi_pad, mj_pad)        # stays in W's native dtype
    Cp = _pad2d(C, mi_pad, kp)
    Bp = _pad2d(B, mj_pad, kp)

    grid = (mi_pad // tm, mj_pad // tn)

    w_bytes = mi_pad * mj_pad * Wp.dtype.itemsize
    cost = pl.CostEstimate(
        flops=2 * mi_pad * mj_pad * kp,
        transcendentals=0,
        bytes_accessed=w_bytes + (mi_pad + mj_pad) * kp * 4 + mi_pad * 4,
    )

    partials = pl.pallas_call(
        _spectral_loss_kernel,
        out_shape=jax.ShapeDtypeStruct((mi_pad, 1), jnp.float32),
        grid_spec=pltpu.PrefetchScalarGridSpec(
            num_scalar_prefetch=0,
            grid=grid,
            in_specs=[
                pl.BlockSpec((tm, tn), lambda i, j: (i, j)),   # W block (streamed)
                pl.BlockSpec((tm, kp), lambda i, j: (i, 0)),   # C rows (resident per i)
                pl.BlockSpec((tn, kp), lambda i, j: (j, 0)),   # B rows
            ],
            out_specs=pl.BlockSpec((tm, 1), lambda i, j: (i, 0)),
            scratch_shapes=[pltpu.VMEM((tm, kp), jnp.float32)],
        ),
        compiler_params=pltpu.CompilerParams(
            # i axis is independent (per-i output block) -> megacore on v7x;
            # j is the reduction axis (innermost, 'arbitrary').
            dimension_semantics=("parallel", "arbitrary"),
            vmem_limit_bytes=48 * 1024 * 1024,
        ),
        cost_estimate=cost,
    )(Wp, Cp, Bp)

    return jnp.sum(partials) / (2.0 * m)


def _reference_loss(W, Y, is_normalized=False):
    m = Y.shape[0]
    W = W.astype(jnp.float32)
    Y = Y.astype(jnp.float32)
    if is_normalized:
        D = jnp.sum(W, axis=1)
        Y = Y / D[:, None]
    diff = Y[:, None, :] - Y[None, :, :]
    d2 = jnp.sum(diff * diff, axis=-1)
    return jnp.sum(W * d2) / (2.0 * m)


if __name__ == "__main__":
    key = jax.random.PRNGKey(0)
    k_w, k_y = jax.random.split(key)

    m, kdim = 256, 8  # small shapes: m samples, k-dim network output
    A = jax.random.uniform(k_w, (m, m), dtype=jnp.float32)
    W = 0.5 * (A + A.T)               # symmetric, non-negative affinity matrix
    Y = jax.random.normal(k_y, (m, kdim), dtype=jnp.float32)

    # Unnormalized Laplacian branch.
    loss = jax.block_until_ready(spectralnet_loss(W, Y, is_normalized=False))
    ref = _reference_loss(W, Y, is_normalized=False)
    assert jnp.allclose(loss, ref, rtol=1e-4, atol=1e-4), (loss, ref)

    # Normalized branch.
    loss_n = jax.block_until_ready(spectralnet_loss(W, Y, is_normalized=True))
    ref_n = _reference_loss(W, Y, is_normalized=True)
    assert jnp.allclose(loss_n, ref_n, rtol=1e-4, atol=1e-4), (loss_n, ref_n)

    # Non-128-multiple m exercises the zero-padding tail path.
    m2 = 200
    A2 = jax.random.uniform(k_w, (m2, m2), dtype=jnp.float32)
    W2 = 0.5 * (A2 + A2.T)
    Y2 = jax.random.normal(k_y, (m2, kdim), dtype=jnp.float32)
    loss2 = jax.block_until_ready(spectralnet_loss(W2, Y2, is_normalized=False))
    ref2 = _reference_loss(W2, Y2, is_normalized=False)
    assert jnp.allclose(loss2, ref2, rtol=1e-4, atol=1e-4), (loss2, ref2)

    # bf16 affinity matrix exercises the native-dtype W stream + in-kernel cast.
    Wb = W.astype(jnp.bfloat16)
    loss_b = jax.block_until_ready(spectralnet_loss(Wb, Y, is_normalized=False))
    ref_b = _reference_loss(Wb, Y, is_normalized=False)
    assert jnp.allclose(loss_b, ref_b, rtol=2e-2, atol=2e-2), (loss_b, ref_b)

    print("KERNEL_OK")
</pallas_src>

<mosaic_0001>
module attributes {stable_mosaic.version = 11 : i64} {
  func.func @_spectral_loss_kernel(%arg0: i32, %arg1: i32, %arg2: memref<256x256xf32, #tpu.memory_space<vmem>>, %arg3: memref<256x10xf32, #tpu.memory_space<vmem>>, %arg4: memref<256x10xf32, #tpu.memory_space<vmem>>, %arg5: memref<256x1xf32, #tpu.memory_space<vmem>>, %arg6: memref<256x10xf32, #tpu.memory_space<vmem>>) attributes {dimension_semantics = [#tpu.dimension_semantics<parallel>, #tpu.dimension_semantics<arbitrary>], iteration_bounds = array<i64: 1, 1>, scalar_prefetch = 0 : i64, scratch_operands = 1 : i64, tpu.core_type = #tpu.core_type<tc>, window_params = [{transform_indices = @transform_0, window_bounds = array<i64: 256, 256>}, {transform_indices = @transform_1, window_bounds = array<i64: 256, 10>}, {transform_indices = @transform_2, window_bounds = array<i64: 256, 10>}, {transform_indices = @transform_3, window_bounds = array<i64: 256, 1>}]} {
    %c0 = arith.constant 0 : index
    %c0_0 = arith.constant 0 : index
    %0 = vector.load %arg2[%c0, %c0_0] : memref<256x256xf32, #tpu.memory_space<vmem>>, vector<256x256xf32>
    %c0_1 = arith.constant 0 : index
    %c0_2 = arith.constant 0 : index
    %1 = vector.load %arg4[%c0_1, %c0_2] : memref<256x10xf32, #tpu.memory_space<vmem>>, vector<256x10xf32>
    %cst = arith.constant dense<0.000000e+00> : vector<256x10xf32>
    %2 = tpu.matmul %0, %1, %cst {dimension_numbers = #tpu.dot_dimension_numbers<[1], [0], [0], [1], [0, 0, 1, 1], [], []>} : vector<256x256xf32>, vector<256x10xf32>, vector<256x10xf32> -> vector<256x10xf32>
    %c0_i32 = arith.constant 0 : i32
    %3 = arith.cmpi eq, %arg1, %c0_i32 : i32
    %4 = arith.extui %3 : i1 to i32
    %c0_i32_3 = arith.constant 0 : i32
    %5 = arith.cmpi ne, %4, %c0_i32_3 : i32
    scf.if %5 {
      %cst_10 = arith.constant 0.000000e+00 : f32
      %12 = vector.broadcast %cst_10 : f32 to vector<256x10xf32>
      %c0_11 = arith.constant 0 : index
      %c0_12 = arith.constant 0 : index
      %13 = vector.load %arg6[%c0_11, %c0_12] : memref<256x10xf32, #tpu.memory_space<vmem>>, vector<256x10xf32>
      tpu.vector_store %arg6[%c0_11, %c0_12], %12 {strides = array<i32>} : memref<256x10xf32, #tpu.memory_space<vmem>>, vector<256x10xf32>,
    } else {
    }
    %c0_4 = arith.constant 0 : index
    %c0_5 = arith.constant 0 : index
    %6 = vector.load %arg6[%c0_4, %c0_5] : memref<256x10xf32, #tpu.memory_space<vmem>>, vector<256x10xf32>
    %7 = arith.addf %6, %2 : vector<256x10xf32>
    %c0_6 = arith.constant 0 : index
    %c0_7 = arith.constant 0 : index
    %8 = vector.load %arg6[%c0_6, %c0_7] : memref<256x10xf32, #tpu.memory_space<vmem>>, vector<256x10xf32>
    tpu.vector_store %arg6[%c0_6, %c0_7], %7 {strides = array<i32>} : memref<256x10xf32, #tpu.memory_space<vmem>>, vector<256x10xf32>,
    %c0_i32_8 = arith.constant 0 : i32
    %9 = arith.cmpi eq, %arg1, %c0_i32_8 : i32
    %10 = arith.extui %9 : i1 to i32
    %c0_i32_9 = arith.constant 0 : i32
    %11 = arith.cmpi ne, %10, %c0_i32_9 : i32
    scf.if %11 {
      %c0_10 = arith.constant 0 : index
      %c0_11 = arith.constant 0 : index
      %12 = vector.load %arg3[%c0_10, %c0_11] : memref<256x10xf32, #tpu.memory_space<vmem>>, vector<256x10xf32>
      %c0_12 = arith.constant 0 : index
      %c0_13 = arith.constant 0 : index
      %13 = vector.load %arg6[%c0_12, %c0_13] : memref<256x10xf32, #tpu.memory_space<vmem>>, vector<256x10xf32>
      %14 = arith.mulf %12, %13 : vector<256x10xf32>
      %cst_14 = arith.constant dense<0.000000e+00> : vector<256xf32>
      %15 = vector.multi_reduction <add>, %14, %cst_14 [1] : vector<256x10xf32> to vector<256xf32>
      %16 = vector.shape_cast %15 : vector<256xf32> to vector<256x1xf32>
      %c0_15 = arith.constant 0 : index
      %c0_16 = arith.constant 0 : index
      %17 = vector.load %arg5[%c0_15, %c0_16] : memref<256x1xf32, #tpu.memory_space<vmem>>, vector<256x1xf32>
      tpu.vector_store %arg5[%c0_15, %c0_16], %16 {strides = array<i32>} : memref<256x1xf32, #tpu.memory_space<vmem>>, vector<256x1xf32>,
    } else {
    }
    return
  }
  func.func @transform_0(%arg0: i32, %arg1: i32) -> (i32, i32) {
    %c0_i32 = arith.constant 0 : i32
    return %arg0, %arg1 : i32, i32
  }
  func.func @transform_1(%arg0: i32, %arg1: i32) -> (i32, i32) {
    %c0_i32 = arith.constant 0 : i32
    %c0_i32_0 = arith.constant 0 : i32
    return %arg0, %c0_i32 : i32, i32
  }
  func.func @transform_2(%arg0: i32, %arg1: i32) -> (i32, i32) {
    %c0_i32 = arith.constant 0 : i32
    %c0_i32_0 = arith.constant 0 : i32
    return %arg1, %c0_i32 : i32, i32
  }
  func.func @transform_3(%arg0: i32, %arg1: i32) -> (i32, i32) {
    %c0_i32 = arith.constant 0 : i32
    %c0_i32_0 = arith.constant 0 : i32
    return %arg0, %c0_i32 : i32, i32
  }
}

</mosaic_0001>

<bundles_post_ra>
// kernel: spectralnet_loss.1
= control target key start
LH: loop header
LB: loop body
LE: loop exit
PB: predicated region body
PF: predicated region fallthrough
CT: control target
= control target key end

     0   :  { %v783_v0 = vmov 0.0|0.0   ;;  %vm339_vm0 = vcmask 80896   ;;  %vm664_vm1 = vcmask 7168   ;;  %s1445_s2 = inlined_call_operand.vmem [shape: f32[256,10], index: 2, kind: input, shape index: {}]   ;;  %s1446_s0 = inlined_call_operand.vmem [shape: f32[256,256], index: 0, kind: input, shape index: {}]   ;;  %s1447_s1 = inlined_call_operand.vmem [shape: f32[256,10], index: 1, kind: input, shape index: {}]   ;;  %s1448_s3 = inlined_call_operand.vmem [shape: f32[256,1], index: 3, kind: output, shape index: {}]  }
   0x1   :  { %701 = vmatprep.subr.bf16.mxu0 %v783_v0  ;;  %749 = vmatprep.subr.bf16.mxu1 %v783_v0  ;;  %v78_v1 = vld [vmem:[%s1445_s2] sm:$0xff]  ;;  %v79_v2 = vld [vmem:[%s1445_s2 + $0x8] sm:$0xff]  ;;  %v80_v3 = vld [vmem:[%s1445_s2 + $0x10] sm:$0xff] }
   0x2   :  { %v702_v4 = vpack.c.bf16 %v79_v2, %v78_v1  ;;  %v81_v5 = vld [vmem:[%s1445_s2 + $0x18] sm:$0xff]  ;;  %v82_v7 = vld [vmem:[%s1445_s2 + $0x20] sm:$0xff]  ;;  %v83_v8 = vld [vmem:[%s1445_s2 + $0x28] sm:$0xff] }
   0x3   :  { %v705_v6 = vpack.c.bf16 %v81_v5, %v80_v3  ;;  %v708_v9 = vpack.c.bf16 %v83_v8, %v82_v7  ;;  %v84_v10 = vld [vmem:[%s1445_s2 + $0x30] sm:$0xff]  ;;  %v85_v11 = vld [vmem:[%s1445_s2 + $0x38] sm:$0xff]  ;;  %v15_v12 = vld [vmem:[%s1446_s0 + $0x8] sm:$0xff] }
   0x4   :  { %703 = vmatpush1.bf16.msra.mxu0 %v702_v4  ;;  %765 = vmatpush1.bf16.msra.mxu1 %v702_v4  ;;  %v711_v13 = vpack.c.bf16 %v85_v11, %v84_v10  ;;  %v47_v14 = vld [vmem:[%s1446_s0 + $0x108] sm:$0xff]  ;;  %v86_v15 = vld [vmem:[%s1445_s2 + $0x40] sm:$0xff]  ;;  %v88_v18 = vld [vmem:[%s1445_s2 + $0x50] sm:$0xff] }
   0x5   :  { %704 = vmatprep.subr.bf16.mxu0 %v783_v0  ;;  %750 = vmatprep.subr.bf16.mxu1 %v783_v0  ;;  %v87_v16 = vld [vmem:[%s1445_s2 + $0x48] sm:$0xff]  ;;  %v89_v19 = vld [vmem:[%s1445_s2 + $0x58] sm:$0xff]  ;;  %v90_v21 = vld [vmem:[%s1445_s2 + $0x60] sm:$0xff] }
   0x6   :  { %174 = vmatprep.mubr.f32.mxu0 %v15_v12  ;;  %254 = vmatprep.mubr.f32.mxu1 %v47_v14  ;;  %v714_v17 = vpack.c.bf16 %v87_v16, %v86_v15  ;;  %v717_v20 = vpack.c.bf16 %v89_v19, %v88_v18  ;;  %v91_v22 = vld [vmem:[%s1445_s2 + $0x68] sm:$0xff]  ;;  %v92_v24 = vld [vmem:[%s1445_s2 + $0x70] sm:$0xff]  ;;  %v93_v25 = vld [vmem:[%s1445_s2 + $0x78] sm:$0xff] }
   0x7   :  { %v720_v23 = vpack.c.bf16 %v91_v22, %v90_v21  ;;  %v723_v26 = vpack.c.bf16 %v93_v25, %v92_v24  ;;  %v94_v27 = vld [vmem:[%s1445_s2 + $0x80] sm:$0xff]  ;;  %v95_v28 = vld [vmem:[%s1445_s2 + $0x88] sm:$0xff]  ;;  %v96_v30 = vld [vmem:[%s1445_s2 + $0x90] sm:$0xff] }
   0x8   :  { %706 = vmatpush1.bf16.msra.mxu0 %v705_v6  ;;  %766 = vmatpush1.bf16.msra.mxu1 %v705_v6  ;;  %v726_v29 = vpack.c.bf16 %v95_v28, %v94_v27  ;;  %v97_v31 = vld [vmem:[%s1445_s2 + $0x98] sm:$0xff]  ;;  %v98_v33 = vld [vmem:[%s1445_s2 + $0xa0] sm:$0xff]  ;;  %v99_v34 = vld [vmem:[%s1445_s2 + $0xa8] sm:$0xff] }
   0x9   :  { %707 = vmatprep.subr.bf16.mxu0 %v783_v0  ;;  %751 = vmatprep.subr.bf16.mxu1 %v783_v0  ;;  %v729_v32 = vpack.c.bf16 %v97_v31, %v96_v30  ;;  %v732_v35 = vpack.c.bf16 %v99_v34, %v98_v33  ;;  %v100_v36 = vld [vmem:[%s1445_s2 + $0xb0] sm:$0xff]  ;;  %v101_v37 = vld [vmem:[%s1445_s2 + $0xb8] sm:$0xff]  ;;  %v102_v39 = vld [vmem:[%s1445_s2 + $0xc0] sm:$0xff] }
   0xa   :  { %v735_v38 = vpack.c.bf16 %v101_v37, %v100_v36  ;;  %v103_v40 = vld [vmem:[%s1445_s2 + $0xc8] sm:$0xff]  ;;  %v104_v42 = vld [vmem:[%s1445_s2 + $0xd0] sm:$0xff]  ;;  %v105_v43 = vld [vmem:[%s1445_s2 + $0xd8] sm:$0xff] }
   0xb   :  { %v738_v41 = vpack.c.bf16 %v103_v40, %v102_v39  ;;  %v741_v44 = vpack.c.bf16 %v105_v43, %v104_v42  ;;  %v106_v45 = vld [vmem:[%s1445_s2 + $0xe0] sm:$0xff]  ;;  %v107_v46 = vld [vmem:[%s1445_s2 + $0xe8] sm:$0xff]  ;;  %v108_v48 = vld [vmem:[%s1445_s2 + $0xf0] sm:$0xff] }
   0xc   :  { %709 = vmatpush1.bf16.msra.mxu0 %v708_v9  ;;  %767 = vmatpush1.bf16.msra.mxu1 %v708_v9  ;;  %v744_v47 = vpack.c.bf16 %v107_v46, %v106_v45  ;;  %v109_v49 = vld [vmem:[%s1445_s2 + $0xf8] sm:$0xff]  ;;  %v14_v51 = vld [vmem:[%s1446_s0] sm:$0xff]  ;;  %v16_v55 = vld [vmem:[%s1446_s0 + $0x10] sm:$0xff] }
   0xd   :  { %710 = vmatprep.subr.bf16.mxu0 %v783_v0  ;;  %752 = vmatprep.subr.bf16.mxu1 %v783_v0  ;;  %v747_v50 = vpack.c.bf16 %v109_v49, %v108_v48  ;;  %v46_v52 = vld [vmem:[%s1446_s0 + $0x100] sm:$0xff]  ;;  %v17_v53 = vld [vmem:[%s1446_s0 + $0x18] sm:$0xff]  ;;  %v48_v56 = vld [vmem:[%s1446_s0 + $0x110] sm:$0xff]  ;;  %v784_v49 = vmov 0.0  }
   0xe   :  { %v49_v54 = vld [vmem:[%s1446_s0 + $0x118] sm:$0xff]  ;;  %v19_v57 = vld [vmem:[%s1446_s0 + $0x28] sm:$0xff]  ;;  %v18_v59 = vld [vmem:[%s1446_s0 + $0x20] sm:$0xff]  ;;  %340 = vst.msk [vmem:[#allocation2] sm:$0xff] %vm339_vm0, %v784_v49 }
   0xf   :  { %v51_v58 = vld [vmem:[%s1446_s0 + $0x128] sm:$0xff]  ;;  %v50_v60 = vld [vmem:[%s1446_s0 + $0x120] sm:$0xff]  ;;  %v21_v61 = vld [vmem:[%s1446_s0 + $0x38] sm:$0xff]  ;;  %341 = vst.msk [vmem:[#allocation2 + $0x8] sm:$0xff] %vm339_vm0, %v784_v49 }
  0x10   :  { %712 = vmatpush1.bf16.msra.mxu0 %v711_v13  ;;  %768 = vmatpush1.bf16.msra.mxu1 %v711_v13  ;;  %v53_v62 = vld [vmem:[%s1446_s0 + $0x138] sm:$0xff]  ;;  %v20_v63 = vld [vmem:[%s1446_s0 + $0x30] sm:$0xff]  ;;  %v23_v1 = vld [vmem:[%s1446_s0 + $0x48] sm:$0xff]  ;;  %342 = vst.msk [vmem:[#allocation2 + $0x10] sm:$0xff] %vm339_vm0, %v784_v49 }
  0x11   :  { %713 = vmatprep.subr.bf16.mxu0 %v783_v0  ;;  %753 = vmatprep.subr.bf16.mxu1 %v783_v0  ;;  %v55_v2 = vld [vmem:[%s1446_s0 + $0x148] sm:$0xff]  ;;  %v22_v3 = vld [vmem:[%s1446_s0 + $0x40] sm:$0xff]  ;;  %v25_v5 = vld [vmem:[%s1446_s0 + $0x58] sm:$0xff]  ;;  %343 = vst.msk [vmem:[#allocation2 + $0x18] sm:$0xff] %vm339_vm0, %v784_v49 }
  0x12   :  { %v54_v4 = vld [vmem:[%s1446_s0 + $0x140] sm:$0xff]  ;;  %v57_v6 = vld [vmem:[%s1446_s0 + $0x158] sm:$0xff]  ;;  %v24_v7 = vld [vmem:[%s1446_s0 + $0x50] sm:$0xff]  ;;  %344 = vst.msk [vmem:[#allocation2 + $0x20] sm:$0xff] %vm339_vm0, %v784_v49 }
  0x13   :  { %v56_v8 = vld [vmem:[%s1446_s0 + $0x150] sm:$0xff]  ;;  %v27_v9 = vld [vmem:[%s1446_s0 + $0x68] sm:$0xff]  ;;  %v26_v11 = vld [vmem:[%s1446_s0 + $0x60] sm:$0xff]  ;;  %345 = vst.msk [vmem:[#allocation2 + $0x28] sm:$0xff] %vm339_vm0, %v784_v49 }
  0x14   :  { %715 = vmatpush1.bf16.msra.mxu0 %v714_v17  ;;  %769 = vmatpush1.bf16.msra.mxu1 %v714_v17  ;;  %v59_v10 = vld [vmem:[%s1446_s0 + $0x168] sm:$0xff]  ;;  %v58_v12 = vld [vmem:[%s1446_s0 + $0x160] sm:$0xff]  ;;  %v29_v13 = vld [vmem:[%s1446_s0 + $0x78] sm:$0xff]  ;;  %346 = vst.msk [vmem:[#allocation2 + $0x30] sm:$0xff] %vm339_vm0, %v784_v49 }
  0x15   :  { %716 = vmatprep.subr.bf16.mxu0 %v783_v0  ;;  %754 = vmatprep.subr.bf16.mxu1 %v783_v0  ;;  %v61_v14 = vld [vmem:[%s1446_s0 + $0x178] sm:$0xff]  ;;  %v28_v15 = vld [vmem:[%s1446_s0 + $0x70] sm:$0xff]  ;;  %v31_v17 = vld [vmem:[%s1446_s0 + $0x88] sm:$0xff]  ;;  %347 = vst.msk [vmem:[#allocation2 + $0x38] sm:$0xff] %vm339_vm0, %v784_v49 }
  0x16   :  { %v60_v16 = vld [vmem:[%s1446_s0 + $0x170] sm:$0xff]  ;;  %v63_v18 = vld [vmem:[%s1446_s0 + $0x188] sm:$0xff]  ;;  %v30_v19 = vld [vmem:[%s1446_s0 + $0x80] sm:$0xff]  ;;  %348 = vst.msk [vmem:[#allocation2 + $0x40] sm:$0xff] %vm339_vm0, %v784_v49 }
  0x17   :  { %v33_v21 = vld [vmem:[%s1446_s0 + $0x98] sm:$0xff]  ;;  %v64_v24 = vld [vmem:[%s1446_s0 + $0x190] sm:$0xff]  ;;  %v35_v25 = vld [vmem:[%s1446_s0 + $0xa8] sm:$0xff]  ;;  %349 = vst.msk [vmem:[#allocation2 + $0x48] sm:$0xff] %vm339_vm0, %v784_v49 }
  0x18   :  { %718 = vmatpush1.bf16.msra.mxu0 %v717_v20  ;;  %770 = vmatpush1.bf16.msra.mxu1 %v717_v20  ;;  %v62_v20 = vld [vmem:[%s1446_s0 + $0x180] sm:$0xff]  ;;  %v65_v22 = vld [vmem:[%s1446_s0 + $0x198] sm:$0xff]  ;;  %v36_v31 = vld [vmem:[%s1446_s0 + $0xb0] sm:$0xff]  ;;  %350 = vst.msk [vmem:[#allocation2 + $0x50] sm:$0xff] %vm339_vm0, %v784_v49 }
  0x19   :  { %719 = vmatprep.subr.bf16.mxu0 %v783_v0  ;;  %755 = vmatprep.subr.bf16.mxu1 %v783_v0  ;;  %v34_v27 = vld [vmem:[%s1446_s0 + $0xa0] sm:$0xff]  ;;  %v69_v30 = vld [vmem:[%s1446_s0 + $0x1b8] sm:$0xff]  ;;  %v39_v33 = vld [vmem:[%s1446_s0 + $0xc8] sm:$0xff]  ;;  %351 = vst.msk [vmem:[#allocation2 + $0x58] sm:$0xff] %vm339_vm0, %v784_v49 }
  0x1a   :  { %v66_v28 = vld [vmem:[%s1446_s0 + $0x1a0] sm:$0xff]  ;;  %v71_v34 = vld [vmem:[%s1446_s0 + $0x1c8] sm:$0xff]  ;;  %v41_v37 = vld [vmem:[%s1446_s0 + $0xd8] sm:$0xff]  ;;  %352 = vst.msk [vmem:[#allocation2 + $0x60] sm:$0xff] %vm339_vm0, %v784_v49 }
  0x1b   :  { %v70_v36 = vld [vmem:[%s1446_s0 + $0x1c0] sm:$0xff]  ;;  %v40_v39 = vld [vmem:[%s1446_s0 + $0xd0] sm:$0xff]  ;;  %v75_v42 = vld [vmem:[%s1446_s0 + $0x1e8] sm:$0xff]  ;;  %353 = vst.msk [vmem:[#allocation2 + $0x68] sm:$0xff] %vm339_vm0, %v784_v49 }
  0x1c   :  { %721 = vmatpush1.bf16.msra.mxu0 %v720_v23  ;;  %771 = vmatpush1.bf16.msra.mxu1 %v720_v23  ;;  %v32_v23 = vld [vmem:[%s1446_s0 + $0x90] sm:$0xff]  ;;  %v42_v43 = vld [vmem:[%s1446_s0 + $0xe0] sm:$0xff]  ;;  %v45_v45 = vld [vmem:[%s1446_s0 + $0xf8] sm:$0xff]  ;;  %354 = vst.msk [vmem:[#allocation2 + $0x70] sm:$0xff] %vm339_vm0, %v784_v49 }
  0x1d   :  { %722 = vmatprep.subr.bf16.mxu0 %v783_v0  ;;  %756 = vmatprep.subr.bf16.mxu1 %v783_v0  ;;  %v72_v40 = vld [vmem:[%s1446_s0 + $0x1d0] sm:$0xff]  ;;  %v77_v46 = vld [vmem:[%s1446_s0 + $0x1f8] sm:$0xff]  ;;  %355 = vst.msk [vmem:[#allocation2 + $0x78] sm:$0xff] %vm339_vm0, %v784_v49  ;;  %356 = vst.msk [vmem:[#allocation2 + $0x80] sm:$0xff] %vm339_vm0, %v784_v49 }
  0x1e   :  { %v76_v48 = vld [vmem:[%s1446_s0 + $0x1f0] sm:$0xff]  ;;  %357 = vst.msk [vmem:[#allocation2 + $0x88] sm:$0xff] %vm339_vm0, %v784_v49  ;;  %358 = vst.msk [vmem:[#allocation2 + $0x90] sm:$0xff] %vm339_vm0, %v784_v49 }
  0x1f   :  { %359 = vst.msk [vmem:[#allocation2 + $0x98] sm:$0xff] %vm339_vm0, %v784_v49  ;;  %360 = vst.msk [vmem:[#allocation2 + $0xa0] sm:$0xff] %vm339_vm0, %v784_v49 }
  0x20   :  { %724 = vmatpush1.bf16.msra.mxu0 %v723_v26  ;;  %772 = vmatpush1.bf16.msra.mxu1 %v723_v26  ;;  %v67_v26 = vld [vmem:[%s1446_s0 + $0x1a8] sm:$0xff]  ;;  %361 = vst.msk [vmem:[#allocation2 + $0xa8] sm:$0xff] %vm339_vm0, %v784_v49  ;;  %362 = vst.msk [vmem:[#allocation2 + $0xb0] sm:$0xff] %vm339_vm0, %v784_v49 }
  0x21   :  { %725 = vmatprep.subr.bf16.mxu0 %v783_v0  ;;  %757 = vmatprep.subr.bf16.mxu1 %v783_v0  ;;  %363 = vst.msk [vmem:[#allocation2 + $0xb8] sm:$0xff] %vm339_vm0, %v784_v49  ;;  %364 = vst.msk [vmem:[#allocation2 + $0xc0] sm:$0xff] %vm339_vm0, %v784_v49 }
  0x22   :  { %365 = vst.msk [vmem:[#allocation2 + $0xc8] sm:$0xff] %vm339_vm0, %v784_v49  ;;  %366 = vst.msk [vmem:[#allocation2 + $0xd0] sm:$0xff] %vm339_vm0, %v784_v49 }
  0x23   :  { %367 = vst.msk [vmem:[#allocation2 + $0xd8] sm:$0xff] %vm339_vm0, %v784_v49  ;;  %368 = vst.msk [vmem:[#allocation2 + $0xe0] sm:$0xff] %vm339_vm0, %v784_v49 }
  0x24   :  { %727 = vmatpush1.bf16.msra.mxu0 %v726_v29  ;;  %773 = vmatpush1.bf16.msra.mxu1 %v726_v29  ;;  %v37_v29 = vld [vmem:[%s1446_s0 + $0xb8] sm:$0xff]  ;;  %369 = vst.msk [vmem:[#allocation2 + $0xe8] sm:$0xff] %vm339_vm0, %v784_v49  ;;  %370 = vst.msk [vmem:[#allocation2 + $0xf0] sm:$0xff] %vm339_vm0, %v784_v49 }
  0x25   :  { %728 = vmatprep.subr.bf16.mxu0 %v783_v0  ;;  %758 = vmatprep.subr.bf16.mxu1 %v783_v0  ;;  %371 = vst.msk [vmem:[#allocation2 + $0xf8] sm:$0xff] %vm339_vm0, %v784_v49 }
  0x28   :  { %730 = vmatpush1.bf16.msra.mxu0 %v729_v32  ;;  %774 = vmatpush1.bf16.msra.mxu1 %v729_v32  ;;  %v68_v32 = vld [vmem:[%s1446_s0 + $0x1b0] sm:$0xff] }
  0x29   :  { %731 = vmatprep.subr.bf16.mxu0 %v783_v0  ;;  %759 = vmatprep.subr.bf16.mxu1 %v783_v0 }
  0x2c   :  { %733 = vmatpush1.bf16.msra.mxu0 %v732_v35  ;;  %775 = vmatpush1.bf16.msra.mxu1 %v732_v35  ;;  %v38_v35 = vld [vmem:[%s1446_s0 + $0xc0] sm:$0xff] }
  0x2d   :  { %734 = vmatprep.subr.bf16.mxu0 %v783_v0  ;;  %760 = vmatprep.subr.bf16.mxu1 %v783_v0 }
  0x30   :  { %736 = vmatpush1.bf16.msra.mxu0 %v735_v38  ;;  %776 = vmatpush1.bf16.msra.mxu1 %v735_v38  ;;  %v73_v38 = vld [vmem:[%s1446_s0 + $0x1d8] sm:$0xff] }
  0x31   :  { %737 = vmatprep.subr.bf16.mxu0 %v783_v0  ;;  %761 = vmatprep.subr.bf16.mxu1 %v783_v0 }
  0x34   :  { %739 = vmatpush1.bf16.msra.mxu0 %v738_v41  ;;  %777 = vmatpush1.bf16.msra.mxu1 %v738_v41  ;;  %v43_v41 = vld [vmem:[%s1446_s0 + $0xe8] sm:$0xff] }
  0x35   :  { %740 = vmatprep.subr.bf16.mxu0 %v783_v0  ;;  %762 = vmatprep.subr.bf16.mxu1 %v783_v0 }
  0x38   :  { %742 = vmatpush1.bf16.msra.mxu0 %v741_v44  ;;  %778 = vmatpush1.bf16.msra.mxu1 %v741_v44  ;;  %v74_v44 = vld [vmem:[%s1446_s0 + $0x1e0] sm:$0xff] }
  0x39   :  { %743 = vmatprep.subr.bf16.mxu0 %v783_v0  ;;  %763 = vmatprep.subr.bf16.mxu1 %v783_v0 }
  0x3c   :  { %745 = vmatpush1.bf16.msra.mxu0 %v744_v47  ;;  %779 = vmatpush1.bf16.msra.mxu1 %v744_v47  ;;  %v44_v47 = vld [vmem:[%s1446_s0 + $0xf0] sm:$0xff] }
  0x3d   :  { %746 = vmatprep.subr.bf16.mxu0 %v783_v0  ;;  %764 = vmatprep.subr.bf16.mxu1 %v783_v0  ;;  %v52_v0 = vld [vmem:[%s1446_s0 + $0x130] sm:$0xff] }
  0x40   :  { %748 = vmatpush1.bf16.msra.mxu0 %v747_v50  ;;  %780 = vmatpush1.bf16.msra.mxu1 %v747_v50  ;;  %v372_v50 = vld [vmem:[#allocation2] sm:$0xff] }
  0x43   :  { %175 = vmatmul.mubr.f32.vlgmr.msra.gmra.mrb[0].mxu0 %v14_v51  ;;  %255 = vmatmul.mubr.f32.vlgmr.msra.gmra.mrb[0].mxu1 %v46_v52  ;;  %v388_v51 = vld [vmem:[#allocation2 + $0x80] sm:$0xff] }
  0x44   :  { %179 = vmatprep.mubr.f32.mxu0 %v17_v53  ;;  %259 = vmatprep.mubr.f32.mxu1 %v49_v54 }
  0x47   :  { %180 = vmatmul.mubr.f32.gmra.mrb[2].mxu0 %v16_v55  ;;  %260 = vmatmul.mubr.f32.gmra.mrb[2].mxu1 %v48_v56 }
  0x48   :  { %184 = vmatprep.mubr.f32.mxu0 %v19_v57  ;;  %264 = vmatprep.mubr.f32.mxu1 %v51_v58  ;;  %v373_v58 = vld [vmem:[#allocation2 + $0x8] sm:$0xff] }
  0x4b   :  { %185 = vmatmul.mubr.f32.gmra.mrb[4].mxu0 %v18_v59  ;;  %265 = vmatmul.mubr.f32.gmra.mrb[4].mxu1 %v50_v60  ;;  %v389_v59 = vld [vmem:[#allocation2 + $0x88] sm:$0xff] }
  0x4c   :  { %189 = vmatprep.mubr.f32.mxu0 %v21_v61  ;;  %269 = vmatprep.mubr.f32.mxu1 %v53_v62 }
  0x4f   :  { %190 = vmatmul.mubr.f32.gmra.mrb[6].mxu0 %v20_v63  ;;  %270 = vmatmul.mubr.f32.gmra.mrb[6].mxu1 %v52_v0 }
  0x50   :  { %194 = vmatprep.mubr.f32.mxu0 %v23_v1  ;;  %274 = vmatprep.mubr.f32.mxu1 %v55_v2  ;;  %v374_v2 = vld [vmem:[#allocation2 + $0x10] sm:$0xff] }
  0x53   :  { %195 = vmatmul.mubr.f32.gmra.mrb[8].mxu0 %v22_v3  ;;  %275 = vmatmul.mubr.f32.gmra.mrb[8].mxu1 %v54_v4  ;;  %v390_v3 = vld [vmem:[#allocation2 + $0x90] sm:$0xff] }
  0x54   :  { %199 = vmatprep.mubr.f32.mxu0 %v25_v5  ;;  %279 = vmatprep.mubr.f32.mxu1 %v57_v6  ;;  %v472_v6 = vld [vmem:[%s1447_s1] sm:$0xff] }
  0x57   :  { %200 = vmatmul.mubr.f32.gmra.mrb[10].mxu0 %v24_v7  ;;  %280 = vmatmul.mubr.f32.gmra.mrb[10].mxu1 %v56_v8 }
  0x58   :  { %204 = vmatprep.mubr.f32.mxu0 %v27_v9  ;;  %284 = vmatprep.mubr.f32.mxu1 %v59_v10  ;;  %v375_v10 = vld [vmem:[#allocation2 + $0x18] sm:$0xff] }
  0x5b   :  { %205 = vmatmul.mubr.f32.gmra.mrb[12].mxu0 %v26_v11  ;;  %285 = vmatmul.mubr.f32.gmra.mrb[12].mxu1 %v58_v12  ;;  %v488_v12 = vld [vmem:[%s1447_s1 + $0x80] sm:$0xff] }
  0x5c   :  { %209 = vmatprep.mubr.f32.mxu0 %v29_v13  ;;  %289 = vmatprep.mubr.f32.mxu1 %v61_v14  ;;  %v391_v14 = vld [vmem:[#allocation2 + $0x98] sm:$0xff] }
  0x5f   :  { %210 = vmatmul.mubr.f32.gmra.mrb[14].mxu0 %v28_v15  ;;  %290 = vmatmul.mubr.f32.gmra.mrb[14].mxu1 %v60_v16 }
  0x60   :  { %214 = vmatprep.mubr.f32.mxu0 %v31_v17  ;;  %294 = vmatprep.mubr.f32.mxu1 %v63_v18 }
  0x63   :  { %215 = vmatmul.mubr.f32.gmra.mrb[16].mxu0 %v30_v19  ;;  %295 = vmatmul.mubr.f32.gmra.mrb[16].mxu1 %v62_v20  ;;  %v489_v19 = vld [vmem:[%s1447_s1 + $0x88] sm:$0xff] }
  0x64   :  { %219 = vmatprep.mubr.f32.mxu0 %v33_v21  ;;  %299 = vmatprep.mubr.f32.mxu1 %v65_v22 }
  0x67   :  { %220 = vmatmul.mubr.f32.gmra.mrb[18].mxu0 %v32_v23  ;;  %300 = vmatmul.mubr.f32.gmra.mrb[18].mxu1 %v64_v24 }
  0x68   :  { %224 = vmatprep.mubr.f32.mxu0 %v35_v25  ;;  %304 = vmatprep.mubr.f32.mxu1 %v67_v26  ;;  %v376_v25 = vld [vmem:[#allocation2 + $0x20] sm:$0xff] }
  0x6b   :  { %225 = vmatmul.mubr.f32.gmra.mrb[20].mxu0 %v34_v27  ;;  %305 = vmatmul.mubr.f32.gmra.mrb[20].mxu1 %v66_v28  ;;  %v473_v27 = vld [vmem:[%s1447_s1 + $0x8] sm:$0xff] }
  0x6c   :  { %229 = vmatprep.mubr.f32.mxu0 %v37_v29  ;;  %309 = vmatprep.mubr.f32.mxu1 %v69_v30  ;;  %v392_v29 = vld [vmem:[#allocation2 + $0xa0] sm:$0xff] }
  0x6f   :  { %230 = vmatmul.mubr.f32.gmra.mrb[22].mxu0 %v36_v31  ;;  %310 = vmatmul.mubr.f32.gmra.mrb[22].mxu1 %v68_v32 }
  0x70   :  { %234 = vmatprep.mubr.f32.mxu0 %v39_v33  ;;  %314 = vmatprep.mubr.f32.mxu1 %v71_v34 }
  0x73   :  { %235 = vmatmul.mubr.f32.gmra.mrb[24].mxu0 %v38_v35  ;;  %315 = vmatmul.mubr.f32.gmra.mrb[24].mxu1 %v70_v36  ;;  %v474_v35 = vld [vmem:[%s1447_s1 + $0x10] sm:$0xff] }
  0x74   :  { %239 = vmatprep.mubr.f32.mxu0 %v41_v37  ;;  %319 = vmatprep.mubr.f32.mxu1 %v73_v38  ;;  %v490_v36 = vld [vmem:[%s1447_s1 + $0x90] sm:$0xff] }
  0x77   :  { %240 = vmatmul.mubr.f32.gmra.mrb[26].mxu0 %v40_v39  ;;  %320 = vmatmul.mubr.f32.gmra.mrb[26].mxu1 %v72_v40 }
  0x78   :  { %244 = vmatprep.mubr.f32.mxu0 %v43_v41  ;;  %324 = vmatprep.mubr.f32.mxu1 %v75_v42  ;;  %v377_v41 = vld [vmem:[#allocation2 + $0x28] sm:$0xff] }
  0x7b   :  { %245 = vmatmul.mubr.f32.gmra.mrb[28].mxu0 %v42_v43  ;;  %325 = vmatmul.mubr.f32.gmra.mrb[28].mxu1 %v74_v44 }
  0x7c   :  { %249 = vmatprep.mubr.f32.mxu0 %v45_v45  ;;  %329 = vmatprep.mubr.f32.mxu1 %v77_v46  ;;  %v393_v45 = vld [vmem:[#allocation2 + $0xa8] sm:$0xff] }
  0x7f   :  { %250 = vmatmul.mubr.f32.gmra.mrb[30].mxu0 %v44_v47  ;;  %330 = vmatmul.mubr.f32.gmra.mrb[30].mxu1 %v76_v48 }
 0x116   :  { %v176_v52 = vpop.f32.mrb[0].mxu0  ;;  %v256_v53 = vpop.f32.mrb[0].mxu1 }
 0x117   :  { %v404_v54 = vadd.f32 %v372_v50, %v176_v52  ;;  %v420_v55 = vadd.f32 %v388_v51, %v256_v53  ;;  %v178_v56 = vpop.f32.mrb[1].mxu0  ;;  %v258_v57 = vpop.f32.mrb[1].mxu1  ;;  %v475_v51 = vld [vmem:[%s1447_s1 + $0x18] sm:$0xff] }
 0x118   :  { %v491_v52 = vld [vmem:[%s1447_s1 + $0x98] sm:$0xff] }
 0x119   :  { %437 = vst.msk [vmem:[#allocation2] sm:$0xff] %vm339_vm0, %v404_v54  ;;  %453 = vst.msk [vmem:[#allocation2 + $0x80] sm:$0xff] %vm339_vm0, %v420_v55 }
 0x11a   :  { %v181_v60 = vpop.f32.mrb[2].mxu0  ;;  %v261_v61 = vpop.f32.mrb[2].mxu1 }
 0x11b   :  { %v405_v62 = vadd.f32 %v373_v58, %v181_v60  ;;  %v421_v63 = vadd.f32 %v389_v59, %v261_v61  ;;  %v183_v0 = vpop.f32.mrb[3].mxu0  ;;  %v263_v1 = vpop.f32.mrb[3].mxu1  ;;  %v378_v58 = vld [vmem:[#allocation2 + $0x30] sm:$0xff] }
 0x11c   :  { %v394_v61 = vld [vmem:[#allocation2 + $0xb0] sm:$0xff] }
 0x11d   :  { %438 = vst.msk [vmem:[#allocation2 + $0x8] sm:$0xff] %vm339_vm0, %v405_v62  ;;  %454 = vst.msk [vmem:[#allocation2 + $0x88] sm:$0xff] %vm339_vm0, %v421_v63 }
 0x11e   :  { %v186_v4 = vpop.f32.mrb[4].mxu0  ;;  %v266_v5 = vpop.f32.mrb[4].mxu1 }
 0x11f   :  { %v406_v7 = vadd.f32 %v374_v2, %v186_v4  ;;  %v188_v8 = vpop.f32.mrb[5].mxu0  ;;  %v422_v9 = vadd.f32 %v390_v3, %v266_v5  ;;  %v268_v11 = vpop.f32.mrb[5].mxu1  ;;  %v476_v4 = vld [vmem:[%s1447_s1 + $0x20] sm:$0xff] }
 0x120   :  { %v504_v13 = vld [vmem:[#allocation2] sm:$0xff] }
 0x121   :  { %v520_v15 = vld [vmem:[#allocation2 + $0x80] sm:$0xff]  ;;  %439 = vst.msk [vmem:[#allocation2 + $0x10] sm:$0xff] %vm339_vm0, %v406_v7  ;;  %455 = vst.msk [vmem:[#allocation2 + $0x90] sm:$0xff] %vm339_vm0, %v422_v9  ;;  %v536_v16 = vmul.f32 %v504_v13, %v472_v6  ;;  %v395_v13 = vld [vmem:[#allocation2 + $0xb8] sm:$0xff] }
 0x122   :  { %v191_v17 = vpop.f32.mrb[6].mxu0  ;;  %v271_v18 = vpop.f32.mrb[6].mxu1  ;;  %v552_v20 = vmul.f32 %v520_v15, %v488_v12  ;;  %v492_v5 = vld [vmem:[%s1447_s1 + $0xa0] sm:$0xff] }
 0x123   :  { %v407_v21 = vadd.f32 %v375_v10, %v191_v17  ;;  %v193_v22 = vpop.f32.mrb[7].mxu0  ;;  %v568_v23 = vsel %vm339_vm0, %v536_v16, 0.0  ;;  %v423_v24 = vadd.f32 %v391_v14, %v271_v18  ;;  %v273_v26 = vpop.f32.mrb[7].mxu1  ;;  %v379_v10 = vld [vmem:[#allocation2 + $0x38] sm:$0xff] }
 0x124   :  { %569 = vadd.xlane.f32.xlu0 %v568_v23  ;;  %v521_v28 = vld [vmem:[#allocation2 + $0x88] sm:$0xff]  ;;  %v616_v33 = vsel %vm339_vm0, %v552_v20, 0.0  ;;  %v380_v26 = vld [vmem:[#allocation2 + $0x40] sm:$0xff] }
 0x125   :  { %v505_v30 = vld [vmem:[#allocation2 + $0x8] sm:$0xff]  ;;  %440 = vst.msk [vmem:[#allocation2 + $0x18] sm:$0xff] %vm339_vm0, %v407_v21  ;;  %456 = vst.msk [vmem:[#allocation2 + $0x98] sm:$0xff] %vm339_vm0, %v423_v24  ;;  %v553_v31 = vmul.f32 %v521_v28, %v489_v19 }
 0x126   :  { %v196_v32 = vpop.f32.mrb[8].mxu0  ;;  %v276_v34 = vpop.f32.mrb[8].mxu1  ;;  %v537_v43 = vmul.f32 %v505_v30, %v473_v27  ;;  %v477_v20 = vld [vmem:[%s1447_s1 + $0x28] sm:$0xff] }
 0x127   :  { %v408_v37 = vadd.f32 %v376_v25, %v196_v32  ;;  %v198_v38 = vpop.f32.mrb[9].mxu0  ;;  %v619_v39 = vsel %vm339_vm0, %v553_v31, 0.0  ;;  %v424_v40 = vadd.f32 %v392_v29, %v276_v34  ;;  %v278_v42 = vpop.f32.mrb[9].mxu1  ;;  %v493_v21 = vld [vmem:[%s1447_s1 + $0xa8] sm:$0xff]  ;;  %v396_v29 = vld [vmem:[#allocation2 + $0xc0] sm:$0xff] }
 0x128   :  { %620 = vadd.xlane.f32.xlu1 %v619_v39  ;;  %617 = vadd.xlane.f32.xlu0 %v616_v33  ;;  %v506_v44 = vld [vmem:[#allocation2 + $0x10] sm:$0xff]  ;;  %v571_v55 = vsel %vm339_vm0, %v537_v43, 0.0  ;;  %v381_v42 = vld [vmem:[#allocation2 + $0x48] sm:$0xff] }
 0x129   :  { %v522_v46 = vld [vmem:[#allocation2 + $0x90] sm:$0xff]  ;;  %441 = vst.msk [vmem:[#allocation2 + $0x20] sm:$0xff] %vm339_vm0, %v408_v37  ;;  %457 = vst.msk [vmem:[#allocation2 + $0xa0] sm:$0xff] %vm339_vm0, %v424_v40  ;;  %v538_v47 = vmul.f32 %v506_v44, %v474_v35 }
 0x12a   :  { %v554_v48 = vmul.f32 %v522_v46, %v490_v36  ;;  %v201_v49 = vpop.f32.mrb[10].mxu0  ;;  %v281_v50 = vpop.f32.mrb[10].mxu1  ;;  %v478_v36 = vld [vmem:[%s1447_s1 + $0x30] sm:$0xff] }
 0x12b   :  { %v409_v53 = vadd.f32 %v377_v41, %v201_v49  ;;  %v203_v54 = vpop.f32.mrb[11].mxu0  ;;  %v574_v56 = vsel %vm339_vm0, %v538_v47, 0.0  ;;  %v425_v57 = vadd.f32 %v393_v45, %v281_v50  ;;  %v283_v59 = vpop.f32.mrb[11].mxu1  ;;  %v494_v37 = vld [vmem:[%s1447_s1 + $0xb0] sm:$0xff]  ;;  %v397_v45 = vld [vmem:[#allocation2 + $0xc8] sm:$0xff] }
 0x12c   :  { %572 = vadd.xlane.f32.xlu0 %v571_v55  ;;  %575 = vadd.xlane.f32.xlu1 %v574_v56  ;;  %v507_v60 = vld [vmem:[#allocation2 + $0x18] sm:$0xff]  ;;  %v622_v63 = vsel %vm339_vm0, %v554_v48, 0.0 }
 0x12d   :  { %v523_v62 = vld [vmem:[#allocation2 + $0x98] sm:$0xff]  ;;  %442 = vst.msk [vmem:[#allocation2 + $0x28] sm:$0xff] %vm339_vm0, %v409_v53  ;;  %458 = vst.msk [vmem:[#allocation2 + $0xa8] sm:$0xff] %vm339_vm0, %v425_v57  ;;  %v539_v0 = vmul.f32 %v507_v60, %v475_v51 }
 0x12e   :  { %v555_v1 = vmul.f32 %v523_v62, %v491_v52  ;;  %v206_v2 = vpop.f32.mrb[12].mxu0  ;;  %v286_v3 = vpop.f32.mrb[12].mxu1  ;;  %v479_v52 = vld [vmem:[%s1447_s1 + $0x38] sm:$0xff] }
 0x12f   :  { %v410_v6 = vadd.f32 %v378_v58, %v206_v2  ;;  %v208_v7 = vpop.f32.mrb[13].mxu0  ;;  %v577_v8 = vsel %vm339_vm0, %v539_v0, 0.0  ;;  %v426_v9 = vadd.f32 %v394_v61, %v286_v3  ;;  %v288_v11 = vpop.f32.mrb[13].mxu1  ;;  %v495_v53 = vld [vmem:[%s1447_s1 + $0xb8] sm:$0xff]  ;;  %v382_v58 = vld [vmem:[#allocation2 + $0x50] sm:$0xff] }
 0x130   :  { %623 = vadd.xlane.f32.xlu0 %v622_v63  ;;  %578 = vadd.xlane.f32.xlu1 %v577_v8  ;;  %v508_v12 = vld [vmem:[#allocation2 + $0x20] sm:$0xff]  ;;  %v625_v15 = vsel %vm339_vm0, %v555_v1, 0.0  ;;  %v398_v61 = vld [vmem:[#allocation2 + $0xd0] sm:$0xff] }
 0x131   :  { %v524_v14 = vld [vmem:[#allocation2 + $0xa0] sm:$0xff]  ;;  %443 = vst.msk [vmem:[#allocation2 + $0x30] sm:$0xff] %vm339_vm0, %v410_v6  ;;  %459 = vst.msk [vmem:[#allocation2 + $0xb0] sm:$0xff] %vm339_vm0, %v426_v9  ;;  %v540_v16 = vmul.f32 %v508_v12, %v476_v4 }
 0x132   :  { %v556_v17 = vmul.f32 %v524_v14, %v492_v5  ;;  %v211_v18 = vpop.f32.mrb[14].mxu0  ;;  %v291_v19 = vpop.f32.mrb[14].mxu1  ;;  %v480_v4 = vld [vmem:[%s1447_s1 + $0x40] sm:$0xff] }
 0x133   :  { %v411_v22 = vadd.f32 %v379_v10, %v211_v18  ;;  %v213_v23 = vpop.f32.mrb[15].mxu0  ;;  %v580_v24 = vsel %vm339_vm0, %v540_v16, 0.0  ;;  %v427_v25 = vadd.f32 %v395_v13, %v291_v19  ;;  %v293_v27 = vpop.f32.mrb[15].mxu1  ;;  %v496_v5 = vld [vmem:[%s1447_s1 + $0xc0] sm:$0xff]  ;;  %v383_v10 = vld [vmem:[#allocation2 + $0x58] sm:$0xff] }
 0x134   :  { %626 = vadd.xlane.f32.xlu1 %v625_v15  ;;  %581 = vadd.xlane.f32.xlu0 %v580_v24  ;;  %v509_v28 = vld [vmem:[#allocation2 + $0x28] sm:$0xff]  ;;  %v628_v31 = vsel %vm339_vm0, %v556_v17, 0.0  ;;  %v399_v13 = vld [vmem:[#allocation2 + $0xd8] sm:$0xff] }
 0x135   :  { %v525_v30 = vld [vmem:[#allocation2 + $0xa8] sm:$0xff]  ;;  %444 = vst.msk [vmem:[#allocation2 + $0x38] sm:$0xff] %vm339_vm0, %v411_v22  ;;  %460 = vst.msk [vmem:[#allocation2 + $0xb8] sm:$0xff] %vm339_vm0, %v427_v25  ;;  %v541_v32 = vmul.f32 %v509_v28, %v477_v20 }
 0x136   :  { %v557_v33 = vmul.f32 %v525_v30, %v493_v21  ;;  %v216_v34 = vpop.f32.mrb[16].mxu0  ;;  %v296_v35 = vpop.f32.mrb[16].mxu1  ;;  %v481_v20 = vld [vmem:[%s1447_s1 + $0x48] sm:$0xff] }
 0x137   :  { %v412_v38 = vadd.f32 %v380_v26, %v216_v34  ;;  %v218_v39 = vpop.f32.mrb[17].mxu0  ;;  %v583_v40 = vsel %vm339_vm0, %v541_v32, 0.0  ;;  %v428_v41 = vadd.f32 %v396_v29, %v296_v35  ;;  %v298_v43 = vpop.f32.mrb[17].mxu1  ;;  %v497_v21 = vld [vmem:[%s1447_s1 + $0xc8] sm:$0xff]  ;;  %v384_v26 = vld [vmem:[#allocation2 + $0x60] sm:$0xff] }
 0x138   :  { %629 = vadd.xlane.f32.xlu0 %v628_v31  ;;  %584 = vadd.xlane.f32.xlu1 %v583_v40  ;;  %v510_v44 = vld [vmem:[#allocation2 + $0x30] sm:$0xff]  ;;  %v631_v47 = vsel %vm339_vm0, %v557_v33, 0.0  ;;  %v400_v29 = vld [vmem:[#allocation2 + $0xe0] sm:$0xff] }
 0x139   :  { %v526_v46 = vld [vmem:[#allocation2 + $0xb0] sm:$0xff]  ;;  %445 = vst.msk [vmem:[#allocation2 + $0x40] sm:$0xff] %vm339_vm0, %v412_v38  ;;  %461 = vst.msk [vmem:[#allocation2 + $0xc0] sm:$0xff] %vm339_vm0, %v428_v41  ;;  %v542_v48 = vmul.f32 %v510_v44, %v478_v36 }
 0x13a   :  { %v558_v49 = vmul.f32 %v526_v46, %v494_v37  ;;  %v221_v50 = vpop.f32.mrb[18].mxu0  ;;  %v301_v51 = vpop.f32.mrb[18].mxu1  ;;  %v482_v36 = vld [vmem:[%s1447_s1 + $0x50] sm:$0xff] }
 0x13b   :  { %v413_v54 = vadd.f32 %v381_v42, %v221_v50  ;;  %v223_v55 = vpop.f32.mrb[19].mxu0  ;;  %v586_v56 = vsel %vm339_vm0, %v542_v48, 0.0  ;;  %v429_v57 = vadd.f32 %v397_v45, %v301_v51  ;;  %v303_v59 = vpop.f32.mrb[19].mxu1  ;;  %v498_v37 = vld [vmem:[%s1447_s1 + $0xd0] sm:$0xff]  ;;  %v385_v42 = vld [vmem:[#allocation2 + $0x68] sm:$0xff] }
 0x13c   :  { %632 = vadd.xlane.f32.xlu1 %v631_v47  ;;  %587 = vadd.xlane.f32.xlu0 %v586_v56  ;;  %v511_v60 = vld [vmem:[#allocation2 + $0x38] sm:$0xff]  ;;  %v634_v63 = vsel %vm339_vm0, %v558_v49, 0.0  ;;  %v401_v45 = vld [vmem:[#allocation2 + $0xe8] sm:$0xff] }
 0x13d   :  { %v527_v62 = vld [vmem:[#allocation2 + $0xb8] sm:$0xff]  ;;  %446 = vst.msk [vmem:[#allocation2 + $0x48] sm:$0xff] %vm339_vm0, %v413_v54  ;;  %462 = vst.msk [vmem:[#allocation2 + $0xc8] sm:$0xff] %vm339_vm0, %v429_v57  ;;  %v543_v0 = vmul.f32 %v511_v60, %v479_v52 }
 0x13e   :  { %v559_v1 = vmul.f32 %v527_v62, %v495_v53  ;;  %v226_v2 = vpop.f32.mrb[20].mxu0  ;;  %v306_v3 = vpop.f32.mrb[20].mxu1  ;;  %v483_v52 = vld [vmem:[%s1447_s1 + $0x58] sm:$0xff] }
 0x13f   :  { %v414_v6 = vadd.f32 %v382_v58, %v226_v2  ;;  %v228_v7 = vpop.f32.mrb[21].mxu0  ;;  %v589_v8 = vsel %vm339_vm0, %v543_v0, 0.0  ;;  %v430_v9 = vadd.f32 %v398_v61, %v306_v3  ;;  %v308_v11 = vpop.f32.mrb[21].mxu1  ;;  %v499_v53 = vld [vmem:[%s1447_s1 + $0xd8] sm:$0xff]  ;;  %v386_v58 = vld [vmem:[#allocation2 + $0x70] sm:$0xff] }
 0x140   :  { %635 = vadd.xlane.f32.xlu0 %v634_v63  ;;  %590 = vadd.xlane.f32.xlu1 %v589_v8  ;;  %v512_v12 = vld [vmem:[#allocation2 + $0x40] sm:$0xff]  ;;  %v637_v15 = vsel %vm339_vm0, %v559_v1, 0.0  ;;  %v402_v61 = vld [vmem:[#allocation2 + $0xf0] sm:$0xff] }
 0x141   :  { %v528_v14 = vld [vmem:[#allocation2 + $0xc0] sm:$0xff]  ;;  %447 = vst.msk [vmem:[#allocation2 + $0x50] sm:$0xff] %vm339_vm0, %v414_v6  ;;  %463 = vst.msk [vmem:[#allocation2 + $0xd0] sm:$0xff] %vm339_vm0, %v430_v9  ;;  %v544_v16 = vmul.f32 %v512_v12, %v480_v4 }
 0x142   :  { %v560_v17 = vmul.f32 %v528_v14, %v496_v5  ;;  %v231_v18 = vpop.f32.mrb[22].mxu0  ;;  %v311_v19 = vpop.f32.mrb[22].mxu1  ;;  %v484_v4 = vld [vmem:[%s1447_s1 + $0x60] sm:$0xff] }
 0x143   :  { %v415_v22 = vadd.f32 %v383_v10, %v231_v18  ;;  %v233_v23 = vpop.f32.mrb[23].mxu0  ;;  %v592_v24 = vsel %vm339_vm0, %v544_v16, 0.0  ;;  %v431_v25 = vadd.f32 %v399_v13, %v311_v19  ;;  %v313_v27 = vpop.f32.mrb[23].mxu1  ;;  %v500_v5 = vld [vmem:[%s1447_s1 + $0xe0] sm:$0xff]  ;;  %v387_v10 = vld [vmem:[#allocation2 + $0x78] sm:$0xff] }
 0x144   :  { %638 = vadd.xlane.f32.xlu1 %v637_v15  ;;  %593 = vadd.xlane.f32.xlu0 %v592_v24  ;;  %v513_v28 = vld [vmem:[#allocation2 + $0x48] sm:$0xff]  ;;  %v640_v31 = vsel %vm339_vm0, %v560_v17, 0.0  ;;  %v403_v13 = vld [vmem:[#allocation2 + $0xf8] sm:$0xff] }
 0x145   :  { %v529_v30 = vld [vmem:[#allocation2 + $0xc8] sm:$0xff]  ;;  %448 = vst.msk [vmem:[#allocation2 + $0x58] sm:$0xff] %vm339_vm0, %v415_v22  ;;  %464 = vst.msk [vmem:[#allocation2 + $0xd8] sm:$0xff] %vm339_vm0, %v431_v25  ;;  %v545_v32 = vmul.f32 %v513_v28, %v481_v20 }
 0x146   :  { %v561_v33 = vmul.f32 %v529_v30, %v497_v21  ;;  %v236_v34 = vpop.f32.mrb[24].mxu0  ;;  %v316_v35 = vpop.f32.mrb[24].mxu1  ;;  %v485_v20 = vld [vmem:[%s1447_s1 + $0x68] sm:$0xff] }
 0x147   :  { %v416_v38 = vadd.f32 %v384_v26, %v236_v34  ;;  %v238_v39 = vpop.f32.mrb[25].mxu0  ;;  %v595_v40 = vsel %vm339_vm0, %v545_v32, 0.0  ;;  %v432_v41 = vadd.f32 %v400_v29, %v316_v35  ;;  %v318_v43 = vpop.f32.mrb[25].mxu1  ;;  %v501_v21 = vld [vmem:[%s1447_s1 + $0xe8] sm:$0xff]  ;;  %v486_v32 = vld [vmem:[%s1447_s1 + $0x70] sm:$0xff] }
 0x148   :  { %641 = vadd.xlane.f32.xlu0 %v640_v31  ;;  %596 = vadd.xlane.f32.xlu1 %v595_v40  ;;  %v514_v44 = vld [vmem:[#allocation2 + $0x50] sm:$0xff]  ;;  %v643_v47 = vsel %vm339_vm0, %v561_v33, 0.0  ;;  %v487_v40 = vld [vmem:[%s1447_s1 + $0x78] sm:$0xff] }
 0x149   :  { %v530_v46 = vld [vmem:[#allocation2 + $0xd0] sm:$0xff]  ;;  %449 = vst.msk [vmem:[#allocation2 + $0x60] sm:$0xff] %vm339_vm0, %v416_v38  ;;  %465 = vst.msk [vmem:[#allocation2 + $0xe0] sm:$0xff] %vm339_vm0, %v432_v41  ;;  %v546_v48 = vmul.f32 %v514_v44, %v482_v36  ;;  %v503_v41 = vld [vmem:[%s1447_s1 + $0xf8] sm:$0xff] }
 0x14a   :  { %v562_v49 = vmul.f32 %v530_v46, %v498_v37  ;;  %v241_v50 = vpop.f32.mrb[26].mxu0  ;;  %v321_v51 = vpop.f32.mrb[26].mxu1  ;;  %v502_v33 = vld [vmem:[%s1447_s1 + $0xf0] sm:$0xff] }
 0x14b   :  { %v417_v54 = vadd.f32 %v385_v42, %v241_v50  ;;  %v243_v55 = vpop.f32.mrb[27].mxu0  ;;  %v598_v56 = vsel %vm339_vm0, %v546_v48, 0.0  ;;  %v433_v57 = vadd.f32 %v401_v45, %v321_v51  ;;  %v323_v59 = vpop.f32.mrb[27].mxu1 }
 0x14c   :  { %644 = vadd.xlane.f32.xlu1 %v643_v47  ;;  %599 = vadd.xlane.f32.xlu0 %v598_v56  ;;  %v515_v60 = vld [vmem:[#allocation2 + $0x58] sm:$0xff]  ;;  %v646_v63 = vsel %vm339_vm0, %v562_v49, 0.0 }
 0x14d   :  { %v531_v62 = vld [vmem:[#allocation2 + $0xd8] sm:$0xff]  ;;  %450 = vst.msk [vmem:[#allocation2 + $0x68] sm:$0xff] %vm339_vm0, %v417_v54  ;;  %466 = vst.msk [vmem:[#allocation2 + $0xe8] sm:$0xff] %vm339_vm0, %v433_v57  ;;  %v547_v0 = vmul.f32 %v515_v60, %v483_v52 }
 0x14e   :  { %v563_v1 = vmul.f32 %v531_v62, %v499_v53  ;;  %v246_v2 = vpop.f32.mrb[28].mxu0  ;;  %v326_v3 = vpop.f32.mrb[28].mxu1 }
 0x14f   :  { %v418_v6 = vadd.f32 %v386_v58, %v246_v2  ;;  %v248_v7 = vpop.f32.mrb[29].mxu0  ;;  %v601_v8 = vsel %vm339_vm0, %v547_v0, 0.0  ;;  %v434_v9 = vadd.f32 %v402_v61, %v326_v3  ;;  %v328_v11 = vpop.f32.mrb[29].mxu1 }
 0x150   :  { %647 = vadd.xlane.f32.xlu0 %v646_v63  ;;  %602 = vadd.xlane.f32.xlu1 %v601_v8  ;;  %v516_v12 = vld [vmem:[#allocation2 + $0x60] sm:$0xff]  ;;  %v649_v15 = vsel %vm339_vm0, %v563_v1, 0.0 }
 0x151   :  { %v532_v14 = vld [vmem:[#allocation2 + $0xe0] sm:$0xff]  ;;  %451 = vst.msk [vmem:[#allocation2 + $0x70] sm:$0xff] %vm339_vm0, %v418_v6  ;;  %467 = vst.msk [vmem:[#allocation2 + $0xf0] sm:$0xff] %vm339_vm0, %v434_v9  ;;  %v548_v16 = vmul.f32 %v516_v12, %v484_v4 }
 0x152   :  { %v564_v17 = vmul.f32 %v532_v14, %v500_v5  ;;  %v251_v18 = vpop.f32.mrb[30].mxu0  ;;  %v331_v19 = vpop.f32.mrb[30].mxu1 }
 0x153   :  { %v419_v22 = vadd.f32 %v387_v10, %v251_v18  ;;  %v253_v23 = vpop.f32.mrb[31].mxu0  ;;  %v604_v24 = vsel %vm339_vm0, %v548_v16, 0.0  ;;  %v435_v25 = vadd.f32 %v403_v13, %v331_v19  ;;  %v333_v26 = vpop.f32.mrb[31].mxu1 }
 0x154   :  { %650 = vadd.xlane.f32.xlu1 %v649_v15  ;;  %605 = vadd.xlane.f32.xlu0 %v604_v24  ;;  %v517_v27 = vld [vmem:[#allocation2 + $0x68] sm:$0xff]  ;;  %v652_v29 = vsel %vm339_vm0, %v564_v17, 0.0 }
 0x155   :  { %v533_v28 = vld [vmem:[#allocation2 + $0xe8] sm:$0xff]  ;;  %452 = vst.msk [vmem:[#allocation2 + $0x78] sm:$0xff] %vm339_vm0, %v419_v22  ;;  %468 = vst.msk [vmem:[#allocation2 + $0xf8] sm:$0xff] %vm339_vm0, %v435_v25  ;;  %v549_v30 = vmul.f32 %v517_v27, %v485_v20 }
 0x156   :  { %v565_v31 = vmul.f32 %v533_v28, %v501_v21 }
 0x157   :  { %v607_v34 = vsel %vm339_vm0, %v549_v30, 0.0 }
 0x158   :  { %653 = vadd.xlane.f32.xlu0 %v652_v29  ;;  %608 = vadd.xlane.f32.xlu1 %v607_v34  ;;  %v518_v35 = vld [vmem:[#allocation2 + $0x70] sm:$0xff]  ;;  %v655_v37 = vsel %vm339_vm0, %v565_v31, 0.0 }
 0x159   :  { %v534_v36 = vld [vmem:[#allocation2 + $0xf0] sm:$0xff]  ;;  %v550_v38 = vmul.f32 %v518_v35, %v486_v32 }
 0x15a   :  { %v566_v39 = vmul.f32 %v534_v36, %v502_v33 }
 0x15b   :  { %v610_v42 = vsel %vm339_vm0, %v550_v38, 0.0 }
 0x15c   :  { %656 = vadd.xlane.f32.xlu1 %v655_v37  ;;  %611 = vadd.xlane.f32.xlu0 %v610_v42  ;;  %v519_v43 = vld [vmem:[#allocation2 + $0x78] sm:$0xff]  ;;  %v658_v45 = vsel %vm339_vm0, %v566_v39, 0.0 }
 0x15d   :  { %v535_v44 = vld [vmem:[#allocation2 + $0xf8] sm:$0xff]  ;;  %v551_v46 = vmul.f32 %v519_v43, %v487_v40 }
 0x15e   :  { %v567_v47 = vmul.f32 %v535_v44, %v503_v41 }
 0x15f   :  { %v613_v48 = vsel %vm339_vm0, %v551_v46, 0.0 }
 0x160   :  { %659 = vadd.xlane.f32.xlu0 %v658_v45  ;;  %614 = vadd.xlane.f32.xlu1 %v613_v48  ;;  %v661_v49 = vsel %vm339_vm0, %v567_v47, 0.0 }
 0x164   :  { %662 = vadd.xlane.f32.xlu1 %v661_v49 }
 0x1b1   :  { %v570_v50 = vpop.xlane.xlu0 %569 }
 0x1b2   :  { %665 = vst.msk [vmem:[%s1448_s3] sm:$0xff] %vm664_vm1, %v570_v50 }
 0x1b5   :  { %v621_v51 = vpop.xlane.xlu1 %620  ;;  %v618_v52 = vpop.xlane.xlu0 %617 }
 0x1b6   :  { %682 = vst.msk [vmem:[%s1448_s3 + $0x88] sm:$0xff] %vm664_vm1, %v621_v51  ;;  %681 = vst.msk [vmem:[%s1448_s3 + $0x80] sm:$0xff] %vm664_vm1, %v618_v52 }
 0x1b9   :  { %v573_v53 = vpop.xlane.xlu0 %572  ;;  %v576_v54 = vpop.xlane.xlu1 %575 }
 0x1ba   :  { %666 = vst.msk [vmem:[%s1448_s3 + $0x8] sm:$0xff] %vm664_vm1, %v573_v53  ;;  %667 = vst.msk [vmem:[%s1448_s3 + $0x10] sm:$0xff] %vm664_vm1, %v576_v54 }
 0x1bd   :  { %v624_v55 = vpop.xlane.xlu0 %623  ;;  %v579_v56 = vpop.xlane.xlu1 %578 }
 0x1be   :  { %683 = vst.msk [vmem:[%s1448_s3 + $0x90] sm:$0xff] %vm664_vm1, %v624_v55  ;;  %668 = vst.msk [vmem:[%s1448_s3 + $0x18] sm:$0xff] %vm664_vm1, %v579_v56 }
 0x1c1   :  { %v627_v57 = vpop.xlane.xlu1 %626  ;;  %v582_v58 = vpop.xlane.xlu0 %581 }
 0x1c2   :  { %684 = vst.msk [vmem:[%s1448_s3 + $0x98] sm:$0xff] %vm664_vm1, %v627_v57  ;;  %669 = vst.msk [vmem:[%s1448_s3 + $0x20] sm:$0xff] %vm664_vm1, %v582_v58 }
 0x1c5   :  { %v630_v59 = vpop.xlane.xlu0 %629  ;;  %v585_v60 = vpop.xlane.xlu1 %584 }
 0x1c6   :  { %685 = vst.msk [vmem:[%s1448_s3 + $0xa0] sm:$0xff] %vm664_vm1, %v630_v59  ;;  %670 = vst.msk [vmem:[%s1448_s3 + $0x28] sm:$0xff] %vm664_vm1, %v585_v60 }
 0x1c9   :  { %v633_v61 = vpop.xlane.xlu1 %632  ;;  %v588_v62 = vpop.xlane.xlu0 %587 }
 0x1ca   :  { %686 = vst.msk [vmem:[%s1448_s3 + $0xa8] sm:$0xff] %vm664_vm1, %v633_v61  ;;  %671 = vst.msk [vmem:[%s1448_s3 + $0x30] sm:$0xff] %vm664_vm1, %v588_v62 }
 0x1cd   :  { %v636_v63 = vpop.xlane.xlu0 %635  ;;  %v591_v0 = vpop.xlane.xlu1 %590 }
 0x1ce   :  { %687 = vst.msk [vmem:[%s1448_s3 + $0xb0] sm:$0xff] %vm664_vm1, %v636_v63  ;;  %672 = vst.msk [vmem:[%s1448_s3 + $0x38] sm:$0xff] %vm664_vm1, %v591_v0 }
 0x1d1   :  { %v639_v1 = vpop.xlane.xlu1 %638  ;;  %v594_v2 = vpop.xlane.xlu0 %593 }
 0x1d2   :  { %688 = vst.msk [vmem:[%s1448_s3 + $0xb8] sm:$0xff] %vm664_vm1, %v639_v1  ;;  %673 = vst.msk [vmem:[%s1448_s3 + $0x40] sm:$0xff] %vm664_vm1, %v594_v2 }
 0x1d5   :  { %v642_v3 = vpop.xlane.xlu0 %641  ;;  %v597_v4 = vpop.xlane.xlu1 %596 }
 0x1d6   :  { %689 = vst.msk [vmem:[%s1448_s3 + $0xc0] sm:$0xff] %vm664_vm1, %v642_v3  ;;  %674 = vst.msk [vmem:[%s1448_s3 + $0x48] sm:$0xff] %vm664_vm1, %v597_v4 }
 0x1d9   :  { %v645_v5 = vpop.xlane.xlu1 %644  ;;  %v600_v6 = vpop.xlane.xlu0 %599 }
 0x1da   :  { %690 = vst.msk [vmem:[%s1448_s3 + $0xc8] sm:$0xff] %vm664_vm1, %v645_v5  ;;  %675 = vst.msk [vmem:[%s1448_s3 + $0x50] sm:$0xff] %vm664_vm1, %v600_v6 }
 0x1dd   :  { %v648_v7 = vpop.xlane.xlu0 %647  ;;  %v603_v8 = vpop.xlane.xlu1 %602 }
 0x1de   :  { %691 = vst.msk [vmem:[%s1448_s3 + $0xd0] sm:$0xff] %vm664_vm1, %v648_v7  ;;  %676 = vst.msk [vmem:[%s1448_s3 + $0x58] sm:$0xff] %vm664_vm1, %v603_v8 }
 0x1e1   :  { %v651_v9 = vpop.xlane.xlu1 %650  ;;  %v606_v10 = vpop.xlane.xlu0 %605 }
 0x1e2   :  { %692 = vst.msk [vmem:[%s1448_s3 + $0xd8] sm:$0xff] %vm664_vm1, %v651_v9  ;;  %677 = vst.msk [vmem:[%s1448_s3 + $0x60] sm:$0xff] %vm664_vm1, %v606_v10 }
 0x1e5   :  { %v654_v11 = vpop.xlane.xlu0 %653  ;;  %v609_v12 = vpop.xlane.xlu1 %608 }
 0x1e6   :  { %693 = vst.msk [vmem:[%s1448_s3 + $0xe0] sm:$0xff] %vm664_vm1, %v654_v11  ;;  %678 = vst.msk [vmem:[%s1448_s3 + $0x68] sm:$0xff] %vm664_vm1, %v609_v12 }
 0x1e9   :  { %v657_v13 = vpop.xlane.xlu1 %656  ;;  %v612_v14 = vpop.xlane.xlu0 %611 }
 0x1ea   :  { %694 = vst.msk [vmem:[%s1448_s3 + $0xe8] sm:$0xff] %vm664_vm1, %v657_v13  ;;  %679 = vst.msk [vmem:[%s1448_s3 + $0x70] sm:$0xff] %vm664_vm1, %v612_v14 }
 0x1ed   :  { %v660_v15 = vpop.xlane.xlu0 %659  ;;  %v615_v16 = vpop.xlane.xlu1 %614 }
 0x1ee   :  { %695 = vst.msk [vmem:[%s1448_s3 + $0xf0] sm:$0xff] %vm664_vm1, %v660_v15  ;;  %680 = vst.msk [vmem:[%s1448_s3 + $0x78] sm:$0xff] %vm664_vm1, %v615_v16 }
 0x1f1   :  { %v663_v17 = vpop.xlane.xlu1 %662 }
 0x1f2   :  { %696 = vst.msk [vmem:[%s1448_s3 + $0xf8] sm:$0xff] %vm664_vm1, %v663_v17 }

</bundles_post_ra>
